<compile_context>
chip_gen: v5e
topology: v5e:2x2
jax: 0.10.0
libtpu: 0.0.40
codegen_flags: <defaults>
</compile_context>

<pallas_src>
import functools

import jax
import jax.numpy as jnp
from jax.experimental import pallas as pl
from jax.experimental.pallas import tpu as pltpu


def _round_up(x, m):
    return ((x + m - 1) // m) * m


def _cdiv(a, b):
    return (a + b - 1) // b


def _fused_mlp_kernel(*refs, n_layers, activation):
    """refs = (x_ref, w0, b0, w1, b1, ..., w_{L-1}, b_{L-1}, o_ref).

    Computes  act(...act(x @ W0 + b0)...) @ W_{L-1} + b_{L-1}  on one batch tile.
    Matmuls run on the MXU in the weights' dtype (bf16 by default) with f32
    accumulation; bias add + activation stay in f32 (VPU/EUP).
    """
    x_ref = refs[0]
    o_ref = refs[-1]
    params = refs[1:-1]

    out = x_ref[...]
    for i in range(n_layers):
        w = params[2 * i][...]
        b = params[2 * i + 1][...]
        lhs = out if out.dtype == w.dtype else out.astype(w.dtype)
        y = jnp.dot(lhs, w, preferred_element_type=jnp.float32)   # MXU, f32 acc
        y = y + b.astype(jnp.float32)                              # (1, D) broadcast
        if i < n_layers - 1:                                       # hidden layers only
            if activation == "tanh":
                y = jnp.tanh(y)
            elif activation == "relu":
                y = jnp.maximum(y, 0.0)
            elif activation == "sigmoid":
                y = jax.nn.sigmoid(y)
            else:
                raise ValueError(f"unknown activation {activation}")
        out = y
    o_ref[...] = out.astype(o_ref.dtype)


class MLPPallas:
    """Mirrors models/simple_models.py::MLP with default flags:
    use_bn=False, output_var=False, bias=True, act_func='tanh'.
    """

    def __init__(self, input_size, hidden_sizes, output_size,
                 act_func="tanh", key=None, dtype=jnp.float32,
                 compute_dtype=jnp.bfloat16):
        if act_func not in ("tanh", "relu", "sigmoid"):
            raise ValueError(f"unknown activation {act_func}")
        self.input_size = int(input_size)
        self.hidden_sizes = list(hidden_sizes)
        self.output_size = int(output_size) if output_size is not None else 1
        self.act_func = act_func
        self.compute_dtype = jnp.dtype(compute_dtype)   # bf16 default (MXU-native)
        key = jax.random.PRNGKey(0) if key is None else key

        sizes = [self.input_size] + self.hidden_sizes + [self.output_size]
        self.n_layers = len(sizes) - 1

        # ---- unpadded f32 parameters (PyTorch nn.Linear default init) -------
        self.weights = []   # (in, out) == PyTorch (out, in) transposed
        self.biases = []
        for din, dout in zip(sizes[:-1], sizes[1:]):
            key, kw, kb = jax.random.split(key, 3)
            bound = 1.0 / (din ** 0.5)
            self.weights.append(jax.random.uniform(kw, (din, dout), dtype, -bound, bound))
            self.biases.append(jax.random.uniform(kb, (dout,), dtype, -bound, bound))

        # ---- lane-dense padded parameters (built once) -----------------------
        # Feature dim of x is NOT padded: layer-0 K stays at input_size.  All
        # other dims are padded to 128; zero K-rows keep the math exact.
        self.sizes_p = [self.input_size] + [_round_up(s, 128) for s in sizes[1:]]
        self.weights_p = []
        self.biases_p = []
        for i, (w, b) in enumerate(zip(self.weights, self.biases)):
            din_p, dout_p = self.sizes_p[i], self.sizes_p[i + 1]
            wp = jnp.zeros((din_p, dout_p), self.compute_dtype)
            wp = wp.at[: w.shape[0], : w.shape[1]].set(w.astype(self.compute_dtype))
            bp = jnp.zeros((1, dout_p), jnp.float32).at[0, : b.shape[0]].set(
                b.astype(jnp.float32))
            self.weights_p.append(wp)
            self.biases_p.append(bp)

        self._param_bytes = sum(int(w.size) * w.dtype.itemsize for w in self.weights_p) \
            + sum(int(b.size) * b.dtype.itemsize for b in self.biases_p)

        # Probe whether this JAX exposes pipeline_mode=pl.Buffered(1) on BlockSpec
        # (single-buffer resident params).  Fall back to default double-buffering.
        self._single_buffer_weights = True
        try:
            pl.BlockSpec((8, 128), lambda i: (0, 0), pipeline_mode=pl.Buffered(1))
        except Exception:
            self._single_buffer_weights = False

    # ----------------------------------------------------------------- helpers
    def _resident_spec(self, shape):
        if self._single_buffer_weights:
            return pl.BlockSpec(shape, lambda i: (0, 0), pipeline_mode=pl.Buffered(1))
        return pl.BlockSpec(shape, lambda i: (0, 0))

    # -------------------------------------------------------------------- call
    def __call__(self, x):
        x2 = x.reshape(-1, self.input_size)              # x.view(-1, input_size)
        B = x2.shape[0]
        din = self.input_size
        dout_p = self.sizes_p[-1]
        out_dtype = x2.dtype

        # Feed the kernel bf16 activations on the bf16 path (halves input DMA).
        if self.compute_dtype == jnp.bfloat16 and x2.dtype != jnp.bfloat16:
            x_in = x2.astype(jnp.bfloat16)
        else:
            x_in = x2

        # ---- generation-aware VMEM budget --------------------------------
        try:
            vmem_cap = int(pltpu.get_tpu_info().vmem_capacity_bytes)
        except Exception:
            vmem_cap = 64 << 20                           # conservative (v7x per-TC)
        budget = (vmem_cap * 3) // 4                      # ~25% headroom

        buf_count = 1 if self._single_buffer_weights else 2
        param_bytes = self._param_bytes * buf_count
        max_wp = max(self.sizes_p[1:])
        per_row = (2 * din * x_in.dtype.itemsize                       # x tile, 2 bufs
                   + 2 * dout_p * jnp.dtype(out_dtype).itemsize        # out tile, 2 bufs
                   + 3 * max_wp * 4)                                   # live f32 interm.
        headroom = budget - param_bytes - (1 << 20)                    # Mosaic scratch
        # TODO(synk): if headroom <= 0 (huge hidden layers on v7x 64 MiB), fall back
        # to a K/N-tiled, non-weight-resident schedule with an f32 accumulator.
        tile_cap = max(8, min(1024, (max(headroom, per_row * 8) // per_row // 8) * 8))

        if B > tile_cap:
            tile_b = tile_cap
        elif B > 8:
            # >= 2 grid steps so v7x's second TensorCore gets work (no-op on v5e/v6e)
            tile_b = min(tile_cap, max(8, _round_up(_cdiv(B, 2), 8)))
        else:
            tile_b = _round_up(max(B, 1), 8)
        grid = _cdiv(B, tile_b)                            # ragged last tile is masked

        vmem_limit = int(min(vmem_cap,
                             max(16 << 20,
                                 (param_bytes + per_row * tile_b + (1 << 20)) * 5 // 4)))

        kernel = functools.partial(_fused_mlp_kernel,
                                   n_layers=self.n_layers,
                                   activation=self.act_func)

        in_specs = [pl.BlockSpec((tile_b, din), lambda i: (i, 0))]
        operands = [x_in]
        for wp, bp in zip(self.weights_p, self.biases_p):
            in_specs.append(self._resident_spec(wp.shape))   # resident weight
            in_specs.append(self._resident_spec(bp.shape))   # resident bias
            operands.append(wp)
            operands.append(bp)

        out_padded = pl.pallas_call(
            kernel,
            out_shape=jax.ShapeDtypeStruct((B, dout_p), out_dtype),
            grid=(grid,),
            in_specs=in_specs,
            out_specs=pl.BlockSpec((tile_b, dout_p), lambda i: (i, 0)),
            compiler_params=pltpu.CompilerParams(
                dimension_semantics=("parallel",),
                vmem_limit_bytes=vmem_limit),
        )(*operands)

        # strip feature padding only (no batch padding was added)
        return out_padded[:, : self.output_size]

    # --------------------------------------------------------------- reference
    def reference(self, x):
        """Pure-JAX reference (unpadded f32 params) for correctness checking."""
        out = x.reshape(-1, self.input_size).astype(jnp.float32)
        act = {"tanh": jnp.tanh,
               "relu": lambda v: jnp.maximum(v, 0.0),
               "sigmoid": jax.nn.sigmoid}[self.act_func]
        for i in range(len(self.hidden_sizes)):
            out = act(out @ self.weights[i] + self.biases[i])
        return out @ self.weights[-1] + self.biases[-1]


if __name__ == "__main__":
    key = jax.random.PRNGKey(0)
    kx, kp = jax.random.split(key)

    # small shapes: batch input (2, 4, 16) -> view(-1, 16) gives (8, 16)
    input_size = 16
    hidden_sizes = [32, 32]
    output_size = 4

    x = jax.random.normal(kx, (2, 4, input_size), dtype=jnp.float32)

    # 1) f32 compute path: bit-tight check vs pure-JAX reference
    mlp_f32 = MLPPallas(input_size, hidden_sizes, output_size,
                        act_func="tanh", key=kp, compute_dtype=jnp.float32)
    z32 = jax.block_until_ready(mlp_f32(x))
    ref = mlp_f32.reference(x)
    assert z32.shape == (8, output_size), z32.shape
    assert jnp.allclose(z32, ref, atol=1e-5, rtol=1e-5), "f32 path mismatch vs reference"

    # 2) default bf16 MXU path (performance path): looser tolerance
    #    (stored weights and x tile are quantized to bf16)
    mlp_bf16 = MLPPallas(input_size, hidden_sizes, output_size,
                         act_func="tanh", key=kp)            # compute_dtype=bf16 default
    zbf = jax.block_until_ready(mlp_bf16(x))
    ref_bf = mlp_bf16.reference(x)
    assert zbf.shape == (8, output_size), zbf.shape
    assert float(jnp.max(jnp.abs(zbf.astype(jnp.float32) - ref_bf))) < 5e-2, \
        "bf16 path mismatch vs reference"

    print("KERNEL_OK")
</pallas_src>

<mosaic_0001>
module attributes {stable_mosaic.version = 11 : i64} {
  func.func @_fused_mlp_kernel(%arg0: i32, %arg1: memref<8x16xf32, #tpu.memory_space<vmem>>, %arg2: memref<16x128xf32, #tpu.memory_space<vmem>>, %arg3: memref<1x128xf32, #tpu.memory_space<vmem>>, %arg4: memref<128x128xf32, #tpu.memory_space<vmem>>, %arg5: memref<1x128xf32, #tpu.memory_space<vmem>>, %arg6: memref<128x128xf32, #tpu.memory_space<vmem>>, %arg7: memref<1x128xf32, #tpu.memory_space<vmem>>, %arg8: memref<8x128xf32, #tpu.memory_space<vmem>>) attributes {dimension_semantics = [#tpu.dimension_semantics<parallel>], iteration_bounds = array<i64: 1>, scalar_prefetch = 0 : i64, scratch_operands = 0 : i64, tpu.core_type = #tpu.core_type<tc>, window_params = [{transform_indices = @transform_0, window_bounds = array<i64: 8, 16>}, {pipeline_mode = #tpu.pipeline_mode<synchronous>, transform_indices = @transform_1, window_bounds = array<i64: 16, 128>}, {pipeline_mode = #tpu.pipeline_mode<synchronous>, transform_indices = @transform_2, window_bounds = array<i64: 1, 128>}, {pipeline_mode = #tpu.pipeline_mode<synchronous>, transform_indices = @transform_3, window_bounds = array<i64: 128, 128>}, {pipeline_mode = #tpu.pipeline_mode<synchronous>, transform_indices = @transform_4, window_bounds = array<i64: 1, 128>}, {pipeline_mode = #tpu.pipeline_mode<synchronous>, transform_indices = @transform_5, window_bounds = array<i64: 128, 128>}, {pipeline_mode = #tpu.pipeline_mode<synchronous>, transform_indices = @transform_6, window_bounds = array<i64: 1, 128>}, {transform_indices = @transform_7, window_bounds = array<i64: 8, 128>}]} {
    %c0 = arith.constant 0 : index
    %c0_0 = arith.constant 0 : index
    %0 = vector.load %arg1[%c0, %c0_0] : memref<8x16xf32, #tpu.memory_space<vmem>>, vector<8x16xf32>
    %c0_1 = arith.constant 0 : index
    %c0_2 = arith.constant 0 : index
    %1 = vector.load %arg2[%c0_1, %c0_2] : memref<16x128xf32, #tpu.memory_space<vmem>>, vector<16x128xf32>
    %c0_3 = arith.constant 0 : index
    %c0_4 = arith.constant 0 : index
    %2 = vector.load %arg3[%c0_3, %c0_4] : memref<1x128xf32, #tpu.memory_space<vmem>>, vector<1x128xf32>
    %cst = arith.constant dense<0.000000e+00> : vector<8x128xf32>
    %3 = tpu.matmul %0, %1, %cst {dimension_numbers = #tpu.dot_dimension_numbers<[1], [0], [0], [1], [0, 0, 1, 1], [], []>} : vector<8x16xf32>, vector<16x128xf32>, vector<8x128xf32> -> vector<8x128xf32>
    %4 = vector.broadcast %2 : vector<1x128xf32> to vector<8x128xf32>
    %5 = arith.addf %3, %4 : vector<8x128xf32>
    %6 = math.tanh %5 : vector<8x128xf32>
    %c0_5 = arith.constant 0 : index
    %c0_6 = arith.constant 0 : index
    %7 = vector.load %arg4[%c0_5, %c0_6] : memref<128x128xf32, #tpu.memory_space<vmem>>, vector<128x128xf32>
    %c0_7 = arith.constant 0 : index
    %c0_8 = arith.constant 0 : index
    %8 = vector.load %arg5[%c0_7, %c0_8] : memref<1x128xf32, #tpu.memory_space<vmem>>, vector<1x128xf32>
    %cst_9 = arith.constant dense<0.000000e+00> : vector<8x128xf32>
    %9 = tpu.matmul %6, %7, %cst_9 {dimension_numbers = #tpu.dot_dimension_numbers<[1], [0], [0], [1], [0, 0, 1, 1], [], []>} : vector<8x128xf32>, vector<128x128xf32>, vector<8x128xf32> -> vector<8x128xf32>
    %10 = vector.broadcast %8 : vector<1x128xf32> to vector<8x128xf32>
    %11 = arith.addf %9, %10 : vector<8x128xf32>
    %12 = math.tanh %11 : vector<8x128xf32>
    %c0_10 = arith.constant 0 : index
    %c0_11 = arith.constant 0 : index
    %13 = vector.load %arg6[%c0_10, %c0_11] : memref<128x128xf32, #tpu.memory_space<vmem>>, vector<128x128xf32>
    %c0_12 = arith.constant 0 : index
    %c0_13 = arith.constant 0 : index
    %14 = vector.load %arg7[%c0_12, %c0_13] : memref<1x128xf32, #tpu.memory_space<vmem>>, vector<1x128xf32>
    %cst_14 = arith.constant dense<0.000000e+00> : vector<8x128xf32>
    %15 = tpu.matmul %12, %13, %cst_14 {dimension_numbers = #tpu.dot_dimension_numbers<[1], [0], [0], [1], [0, 0, 1, 1], [], []>} : vector<8x128xf32>, vector<128x128xf32>, vector<8x128xf32> -> vector<8x128xf32>
    %16 = vector.broadcast %14 : vector<1x128xf32> to vector<8x128xf32>
    %17 = arith.addf %15, %16 : vector<8x128xf32>
    %c0_15 = arith.constant 0 : index
    %c0_16 = arith.constant 0 : index
    %18 = vector.load %arg8[%c0_15, %c0_16] : memref<8x128xf32, #tpu.memory_space<vmem>>, vector<8x128xf32>
    tpu.vector_store %arg8[%c0_15, %c0_16], %17 {strides = array<i32>} : memref<8x128xf32, #tpu.memory_space<vmem>>, vector<8x128xf32>,
    return
  }
  func.func @transform_0(%arg0: i32) -> (i32, i32) {
    %c0_i32 = arith.constant 0 : i32
    %c0_i32_0 = arith.constant 0 : i32
    return %arg0, %c0_i32 : i32, i32
  }
  func.func @transform_1(%arg0: i32) -> (i32, i32) {
    %c0_i32 = arith.constant 0 : i32
    %c0_i32_0 = arith.constant 0 : i32
    %c0_i32_1 = arith.constant 0 : i32
    return %c0_i32, %c0_i32_0 : i32, i32
  }
  func.func @transform_2(%arg0: i32) -> (i32, i32) {
    %c0_i32 = arith.constant 0 : i32
    %c0_i32_0 = arith.constant 0 : i32
    %c0_i32_1 = arith.constant 0 : i32
    return %c0_i32, %c0_i32_0 : i32, i32
  }
  func.func @transform_3(%arg0: i32) -> (i32, i32) {
    %c0_i32 = arith.constant 0 : i32
    %c0_i32_0 = arith.constant 0 : i32
    %c0_i32_1 = arith.constant 0 : i32
    return %c0_i32, %c0_i32_0 : i32, i32
  }
  func.func @transform_4(%arg0: i32) -> (i32, i32) {
    %c0_i32 = arith.constant 0 : i32
    %c0_i32_0 = arith.constant 0 : i32
    %c0_i32_1 = arith.constant 0 : i32
    return %c0_i32, %c0_i32_0 : i32, i32
  }
  func.func @transform_5(%arg0: i32) -> (i32, i32) {
    %c0_i32 = arith.constant 0 : i32
    %c0_i32_0 = arith.constant 0 : i32
    %c0_i32_1 = arith.constant 0 : i32
    return %c0_i32, %c0_i32_0 : i32, i32
  }
  func.func @transform_6(%arg0: i32) -> (i32, i32) {
    %c0_i32 = arith.constant 0 : i32
    %c0_i32_0 = arith.constant 0 : i32
    %c0_i32_1 = arith.constant 0 : i32
    return %c0_i32, %c0_i32_0 : i32, i32
  }
  func.func @transform_7(%arg0: i32) -> (i32, i32) {
    %c0_i32 = arith.constant 0 : i32
    %c0_i32_0 = arith.constant 0 : i32
    return %arg0, %c0_i32 : i32, i32
  }
}

</mosaic_0001>

<bundles_post_ra>
// kernel: tpu_custom_call.1
= control target key start
LH: loop header
LB: loop body
LE: loop exit
PB: predicated region body
PF: predicated region fallthrough
CT: control target
= control target key end

     0   :  { %12 = vsyncpa [#allocation3], 0  ;;  %s435_s0 = inlined_call_operand.hbm [shape: f32[8,16], index: 0, kind: input, shape index: {}]   ;;  %s436_s1 = inlined_call_operand.hbm [shape: f32[16,128], index: 1, kind: input, shape index: {}]   ;;  %s437_s2 = inlined_call_operand.vmem [shape: f32[1,128], index: 2, kind: input, shape index: {}]   ;;  %s438_s3 = inlined_call_operand.hbm [shape: f32[128,128], index: 3, kind: input, shape index: {}]   ;;  %s439_s4 = inlined_call_operand.vmem [shape: f32[1,128], index: 4, kind: input, shape index: {}]   ;;  %s440_s5 = inlined_call_operand.hbm [shape: f32[128,128], index: 5, kind: input, shape index: {}]   ;;  %s441_s6 = inlined_call_operand.vmem [shape: f32[1,128], index: 6, kind: input, shape index: {}]   ;;  %s442_s7 = inlined_call_operand.hbm [shape: f32[8,128], index: 7, kind: output, shape index: {}]  }
   0x1   :  { %13 = vsyncpa [#allocation6], 0 }
   0x2   :  { %14 = vsyncpa [#allocation9], 0  ;;  %s31_s26 = sshll.u32 %s436_s1, 4  ;;  %s32_s26 = int_to_ptr.hbm [resolvable:$true] %s31_s26 }
   0x3   :  { %15 = vsyncpa [#allocation4], 0  ;;  %s364_s27 = smov [#allocation5]   ;;  %s21_s8 = sshll.u32 %s435_s0, 4  ;;  %s22_s8 = int_to_ptr.hbm [resolvable:$true] %s21_s8 }
   0x4   :  { %s33_s28 = sshll.u32 %s364_s27, 4  ;;  %s365_s9 = smov 128   ;;  %s34_s28 = int_to_ptr.vmem [resolvable:$true] %s33_s28 }
   0x5   :  { %s366_s10 = smov 8   ;;  %s367_s11 = smov [#allocation2]  }
   0x6   :  { %39 = dma.hbm_to_vmem [thread:$0]  %s32_s26, 256, %s34_s28, [#allocation6], %s365_s9, %s365_s9, %s366_s10  }
   0x7   :  { %s23_s12 = sshll.u32 %s367_s11, 4  ;;  %s46_s15 = sshll.u32 %s438_s3, 4  ;;  %s24_s12 = int_to_ptr.vmem [resolvable:$true] %s23_s12  ;;  %s47_s15 = int_to_ptr.hbm [resolvable:$true] %s46_s15 }
   0x8   :  { %26 = dma.hbm_to_vmem [thread:$0]  %s22_s8, 128, %s24_s12, [#allocation3]  }
   0x9   :  { %s61_s17 = sshll.u32 %s440_s5, 4  ;;  %s368_s18 = smov [#allocation7]   ;;  %s62_s17 = int_to_ptr.hbm [resolvable:$true] %s61_s17 }
   0xa   :  { %s48_s19 = sshll.u32 %s368_s18, 4  ;;  %s369_s0 = smov [#allocation8]   ;;  %s49_s19 = int_to_ptr.vmem [resolvable:$true] %s48_s19 }
   0xb   :  { %54 = dma.hbm_to_vmem [thread:$0]  %s47_s15, 2048, %s49_s19, [#allocation6], %s365_s9, %s365_s9, %s366_s10  }
   0xc   :  { %s63_s20 = sshll.u32 %s369_s0, 4  ;;  %s64_s20 = int_to_ptr.vmem [resolvable:$true] %s63_s20 }
   0xd   :  { %69 = dma.hbm_to_vmem [thread:$0]  %s62_s17, 2048, %s64_s20, [#allocation9], %s365_s9, %s365_s9, %s366_s10  }
   0xe   :  { %356 = dma.done.wait [#allocation3], 128  }
   0xf   :  { %357 = vsyncadd [#allocation3], 4294967168 }
  0x10   :  { %358 = dma.done.wait [#allocation6], 2304  }
  0x11   :  { %359 = vsyncadd [#allocation6], 4294964992 }
  0x12   :  { %360 = dma.done.wait [#allocation9], 2048  }
  0x13   :  { %361 = vsyncadd [#allocation9], 4294965248  ;;  %v90_v0 = vld [vmem:[#allocation5 + $0x8] sm:$0xff]  ;;  %v89_v1 = vld [vmem:[#allocation5] sm:$0xff]  ;;  %vm95_vm0 = vcmask 130048   ;;  %s370_s24 = smov [#allocation10]  }
  0x14   :  { %113 = vmatpush.msra.mxu0 %v90_v0  ;;  %v88_v2 = vld [vmem:[#allocation2] sm:$0xff]  ;;  %v135_v3 = vld [vmem:[#allocation7 + $0x78] sm:$0xff]  ;;  %v134_v4 = vld [vmem:[#allocation7 + $0x70] sm:$0xff]  ;;  %s207_s25 = sshll.u32 %s370_s24, 4  ;;  %s209_s28 = sshll.u32 %s442_s7, 4  ;;  %s208_s25 = int_to_ptr.vmem [resolvable:$true] %s207_s25  ;;  %s210_s28 = int_to_ptr.hbm [resolvable:$true] %s209_s28 }
  0x15   :  { %140 = vmatpush.msra.mxu1 %v135_v3  ;;  %v133_v5 = vld [vmem:[#allocation7 + $0x68] sm:$0xff]  ;;  %v132_v6 = vld [vmem:[#allocation7 + $0x60] sm:$0xff]  ;;  %v131_v7 = vld [vmem:[#allocation7 + $0x58] sm:$0xff] }
  0x16   :  { %114 = vmatpush.msra.mxu0 %v89_v1  ;;  %v130_v8 = vld [vmem:[#allocation7 + $0x50] sm:$0xff]  ;;  %v129_v9 = vld [vmem:[#allocation7 + $0x48] sm:$0xff]  ;;  %v128_v10 = vld [vmem:[#allocation7 + $0x40] sm:$0xff] }
  0x17   :  { %221 = vmatmul.msk.f32.vlgmr.msra.gmra.mxu0 %vm95_vm0, %v88_v2  ;;  %141 = vmatpush.msra.mxu1 %v134_v4  ;;  %v127_v11 = vld [vmem:[#allocation7 + $0x38] sm:$0xff]  ;;  %v126_v12 = vld [vmem:[#allocation7 + $0x30] sm:$0xff]  ;;  %v125_v13 = vld [vmem:[#allocation7 + $0x28] sm:$0xff] }
  0x18   :  { %v124_v14 = vld [vmem:[#allocation7 + $0x20] sm:$0xff]  ;;  %v123_v15 = vld [vmem:[#allocation7 + $0x18] sm:$0xff]  ;;  %v122_v16 = vld [vmem:[#allocation7 + $0x10] sm:$0xff] }
  0x19   :  { %142 = vmatpush.msra.mxu1 %v133_v5  ;;  %v121_v17 = vld [vmem:[#allocation7 + $0x8] sm:$0xff]  ;;  %v120_v18 = vld [vmem:[#allocation7] sm:$0xff]  ;;  %v176_v19 = vld [vmem:[#allocation8 + $0x78] sm:$0xff] }
  0x1a   :  { %v175_v20 = vld [vmem:[#allocation8 + $0x70] sm:$0xff]  ;;  %181 = vmatpush.msra.mxu2 %v176_v19  ;;  %v174_v21 = vld [vmem:[#allocation8 + $0x68] sm:$0xff]  ;;  %v173_v22 = vld [vmem:[#allocation8 + $0x60] sm:$0xff] }
  0x1b   :  { %143 = vmatpush.msra.mxu1 %v132_v6  ;;  %v172_v23 = vld [vmem:[#allocation8 + $0x58] sm:$0xff]  ;;  %v171_v24 = vld [vmem:[#allocation8 + $0x50] sm:$0xff]  ;;  %v170_v25 = vld [vmem:[#allocation8 + $0x48] sm:$0xff] }
  0x1c   :  { %182 = vmatpush.msra.mxu2 %v175_v20  ;;  %v169_v26 = vld [vmem:[#allocation8 + $0x40] sm:$0xff]  ;;  %v168_v27 = vld [vmem:[#allocation8 + $0x38] sm:$0xff]  ;;  %v167_v28 = vld [vmem:[#allocation8 + $0x30] sm:$0xff] }
  0x1d   :  { %144 = vmatpush.msra.mxu1 %v131_v7  ;;  %v166_v29 = vld [vmem:[#allocation8 + $0x28] sm:$0xff]  ;;  %v165_v34 = vld [vmem:[#allocation8 + $0x20] sm:$0xff]  ;;  %v164_v35 = vld [vmem:[#allocation8 + $0x18] sm:$0xff] }
  0x1e   :  { %183 = vmatpush.msra.mxu2 %v174_v21  ;;  %v229_v30 = vld [vmem:[%s437_s2] ss:$0 sm:$0xff]  ;;  %v163_v36 = vld [vmem:[#allocation8 + $0x10] sm:$0xff]  ;;  %v161_v38 = vld [vmem:[#allocation8] sm:$0xff] }
  0x1f   :  { %145 = vmatpush.msra.mxu1 %v130_v8  ;;  %v162_v37 = vld [vmem:[#allocation8 + $0x8] sm:$0xff] }
  0x20   :  { %184 = vmatpush.msra.mxu2 %v173_v22  ;;  %v230_v39 = vld [vmem:[%s439_s4] ss:$0 sm:$0xff] }
  0x21   :  { %146 = vmatpush.msra.mxu1 %v129_v9  ;;  %v231_v43 = vld [vmem:[%s441_s6] ss:$0 sm:$0xff] }
  0x22   :  { %185 = vmatpush.msra.mxu2 %v172_v23 }
  0x23   :  { %147 = vmatpush.msra.mxu1 %v128_v10 }
  0x24   :  { %186 = vmatpush.msra.mxu2 %v171_v24 }
  0x25   :  { %148 = vmatpush.msra.mxu1 %v127_v11 }
  0x26   :  { %187 = vmatpush.msra.mxu2 %v170_v25 }
  0x27   :  { %149 = vmatpush.msra.mxu1 %v126_v12 }
  0x28   :  { %188 = vmatpush.msra.mxu2 %v169_v26 }
  0x29   :  { %150 = vmatpush.msra.mxu1 %v125_v13 }
  0x2a   :  { %189 = vmatpush.msra.mxu2 %v168_v27 }
  0x2b   :  { %151 = vmatpush.msra.mxu1 %v124_v14 }
  0x2c   :  { %190 = vmatpush.msra.mxu2 %v167_v28 }
  0x2d   :  { %152 = vmatpush.msra.mxu1 %v123_v15 }
  0x2e   :  { %191 = vmatpush.msra.mxu2 %v166_v29 }
  0x2f   :  { %153 = vmatpush.msra.mxu1 %v122_v16 }
  0x30   :  { %192 = vmatpush.msra.mxu2 %v165_v34 }
  0x31   :  { %154 = vmatpush.msra.mxu1 %v121_v17 }
  0x32   :  { %193 = vmatpush.msra.mxu2 %v164_v35 }
  0x33   :  { %155 = vmatpush.msra.mxu1 %v120_v18 }
  0x34   :  { %194 = vmatpush.msra.mxu2 %v163_v36 }
  0x36   :  { %195 = vmatpush.msra.mxu2 %v162_v37 }
  0x38   :  { %196 = vmatpush.msra.mxu2 %v161_v38 }
  0x94   :  { %v116_v31 = vpop.f32.mrf.mxu0 }
  0x95   :  { %v117_v32 = vadd.f32 %v229_v30, %v116_v31 }
  0x97   :  { %232 = vtanh.f32 %v117_v32 }
  0x9d   :  { %v233_v33 = vpop.eup %232 }
  0x9e   :  { %156 = vmatmul.f32.vlgmr.msra.gmra.mxu1 %v233_v33 }
 0x11b   :  { %v157_v40 = vpop.f32.mrf.mxu1 }
 0x11c   :  { %v158_v41 = vadd.f32 %v230_v39, %v157_v40 }
 0x11e   :  { %234 = vtanh.f32 %v158_v41 }
 0x124   :  { %v235_v42 = vpop.eup %234 }
 0x125   :  { %197 = vmatmul.f32.vlgmr.msra.gmra.mxu2 %v235_v42 }
 0x1a8   :  { %v198_v44 = vpop.f32.mrf.mxu2 }
 0x1a9   :  { %v199_v45 = vadd.f32 %v231_v43, %v198_v44 }
 0x1ab   :  { %201 = vst [vmem:[#allocation10] sm:$0xff] %v199_v45 }
 0x1ac   :  { %212 = dma.vmem_to_hbm [thread:$0]  %s208_s25, 128, %s210_s28, [#allocation4]  }
 0x1ad   :  { %362 = dma.done.wait [#allocation4], 128  }
 0x1ae   :  { %363 = vsyncadd [#allocation4], 4294967168 }
 0x1af   :  { %217 = vsyncpa [#allocation3], 1 }
 0x1b0   :  { %218 = vsyncpa [#allocation6], 1 }
 0x1b1   :  { %219 = vsyncpa [#allocation9], 1 }
 0x1b2   :  { %220 = vsyncpa [#allocation4], 1 }

</bundles_post_ra>
